<compile_context>
chip_gen: v7x
topology: tpu7x:2x2x1
jax: 0.10.0
libtpu: 0.0.40
codegen_flags: <defaults>
</compile_context>

<pallas_src>
import jax
import jax.numpy as jnp
from jax.experimental import pallas as pl
from jax.experimental.pallas import tpu as pltpu


INPUT_SIZE = 15
HIDDEN_SIZE = 128
NUM_ACTIONS = 4
HEAD_PAD = 128                         # lane-padded width of fused actor|critic output
OUT_WIDTH = HIDDEN_SIZE + HEAD_PAD     # fused per-step output: [h_new | heads]


def _actor_critic_kernel(h0_ref, x_ref, wg_ref, wh_ref, out_ref, hx_ref):
    """Grid = (T,). One GRU+heads step per grid iteration; state carried in VMEM.

    h0_ref : (B, H)            initial hidden state, read only at t == 0
    x_ref  : (B, I)            this step's observation (time axis squeezed)
    wg_ref : (H+I+1, 4H)       fused gate weights, cols [r|z|i_n|h_n], biases in last row
    wh_ref : (H+8, HEAD_PAD)   fused actor|critic weights; sublane row H holds the bias
    out_ref: (B, H+HEAD_PAD)   fused per-step output [h_new | actor|critic|pad]
    hx_ref : (B, H+I+1)        VMEM scratch holding [h | x | 1]; persists across steps
    """
    t = pl.program_id(0)
    B, H = h0_ref.shape
    I = x_ref.shape[-1]

    @pl.when(t == 0)
    def _init():
        hx_ref[:, 0:H] = h0_ref[...]                                   # carried hidden
        hx_ref[:, H + I:H + I + 1] = jnp.ones((B, 1), jnp.float32)     # bias column

    # Stream this step's observation into the contraction buffer.
    hx_ref[:, H:H + I] = x_ref[...]

    hx = hx_ref[...]
    h = hx[:, 0:H]

    # Single MXU push covering both GRU gate matmuls + both bias vectors.
    g = jnp.dot(hx, wg_ref[...], preferred_element_type=jnp.float32)   # (B, 4H)

    r = jax.nn.sigmoid(g[:, 0:H])
    z = jax.nn.sigmoid(g[:, H:2 * H])
    n = jnp.tanh(g[:, 2 * H:3 * H] + r * g[:, 3 * H:4 * H])
    h_new = (1.0 - z) * n + z * h                                      # (B, H)

    # Carry the hidden state to the next grid step.
    hx_ref[:, 0:H] = h_new

    # Fused actor|critic head (bias folded in as row H of the weight tile).
    heads = (jnp.dot(h_new, wh_ref[0:H, :], preferred_element_type=jnp.float32)
             + wh_ref[H:H + 1, :])                                     # (B, HEAD_PAD)

    # One lane-dense fused output block: two lane-aligned 128-wide stores.
    out_ref[:, 0:H] = h_new
    out_ref[:, H:] = heads


def pack_params(p):
    """Pack torch-layout params into the fused kernel layout (done once)."""
    H = p["w_hh"].shape[0]
    I = p["w_ih"].shape[0]
    A = p["w_actor"].shape[1]
    w_ih, w_hh = p["w_ih"], p["w_hh"]
    b_ih, b_hh = p["b_ih"][0], p["b_hh"][0]

    def col_block(hh_cols, ih_cols, bias_row):
        # contraction rows are ordered [h (H) | x (I) | 1 (bias)]
        return jnp.concatenate([hh_cols, ih_cols, bias_row[None, :]], axis=0)

    r_cols = col_block(w_hh[:, 0:H], w_ih[:, 0:H], b_ih[0:H] + b_hh[0:H])
    z_cols = col_block(w_hh[:, H:2 * H], w_ih[:, H:2 * H],
                       b_ih[H:2 * H] + b_hh[H:2 * H])
    in_cols = col_block(jnp.zeros((H, H), jnp.float32), w_ih[:, 2 * H:3 * H],
                        b_ih[2 * H:3 * H])
    hn_cols = col_block(w_hh[:, 2 * H:3 * H], jnp.zeros((I, H), jnp.float32),
                        b_hh[2 * H:3 * H])
    w_gates = jnp.concatenate([r_cols, z_cols, in_cols, hn_cols], axis=1)  # (H+I+1, 4H)

    # Fused heads; bias lives in sublane row H (rows H+1..H+7 are zero padding).
    w_heads = (jnp.zeros((H + 8, HEAD_PAD), jnp.float32)
               .at[:H, :A].set(p["w_actor"])
               .at[:H, A:A + 1].set(p["w_critic"])
               .at[H, :A].set(p["b_actor"][0])
               .at[H, A:A + 1].set(p["b_critic"][0]))
    return {"w_gates": w_gates, "w_heads": w_heads}


def actor_critic_sequence(xs, hidden, packed, num_actions=NUM_ACTIONS):
    """xs: (T, B, input_size) f32; hidden: (1, B, H) f32.
    Returns (logits (T,B,A), values (T,B,1), final hidden (1,B,H))."""
    T, B, I = xs.shape
    H = hidden.shape[-1]
    h0 = hidden[0]                                     # (B, H)

    out = pl.pallas_call(
        _actor_critic_kernel,
        out_shape=jax.ShapeDtypeStruct((T, B, OUT_WIDTH), jnp.float32),
        grid_spec=pltpu.PrefetchScalarGridSpec(
            num_scalar_prefetch=0,
            grid=(T,),
            in_specs=[
                pl.BlockSpec((B, H), lambda t: (0, 0)),               # h0 (resident)
                pl.BlockSpec((None, B, I), lambda t: (t, 0, 0)),      # x_t (streamed)
                pl.BlockSpec((H + I + 1, 4 * H), lambda t: (0, 0)),   # gates (DMA once)
                pl.BlockSpec((H + 8, HEAD_PAD), lambda t: (0, 0)),    # heads (DMA once)
            ],
            out_specs=pl.BlockSpec((None, B, OUT_WIDTH), lambda t: (t, 0, 0)),
            scratch_shapes=[pltpu.VMEM((B, H + I + 1), jnp.float32)],
        ),
        # Time axis carries the hidden state -> sequential.
        # TODO(synk): for v5e repeated single-step decode (T=1 unavoidable), use
        # cross-call weight residency (P10) instead of re-fetching ~360 KB/step.
        compiler_params=pltpu.CompilerParams(
            dimension_semantics=("arbitrary",)),
    )(h0, xs, packed["w_gates"], packed["w_heads"])

    hiddens = out[:, :, :H]
    logits = out[:, :, H:H + num_actions]
    values = out[:, :, H + num_actions:H + num_actions + 1]
    return logits, values, hiddens[-1][None, :, :]


def actor_critic_forward(x, hidden, packed, num_actions=NUM_ACTIONS):
    """Single-step forward matching the torch module's forward(x, hidden)."""
    logits, values, new_hidden = actor_critic_sequence(
        x[None], hidden, packed, num_actions)
    return logits[0], values[0], new_hidden


def init_params(key, input_size=INPUT_SIZE, hidden_size=HIDDEN_SIZE,
                num_actions=NUM_ACTIONS):
    """Deterministic synthetic params in torch layout (stored transposed)."""
    ks = jax.random.split(key, 8)
    s = 1.0 / jnp.sqrt(hidden_size)

    def u(k, shape):
        return jax.random.uniform(k, shape, jnp.float32, -s, s)

    return {
        "w_ih": u(ks[0], (input_size, 3 * hidden_size)),
        "w_hh": u(ks[1], (hidden_size, 3 * hidden_size)),
        "b_ih": u(ks[2], (1, 3 * hidden_size)),
        "b_hh": u(ks[3], (1, 3 * hidden_size)),
        "w_actor": u(ks[4], (hidden_size, num_actions)),
        "b_actor": u(ks[5], (1, num_actions)),
        "w_critic": u(ks[6], (hidden_size, 1)),
        "b_critic": u(ks[7], (1, 1)),
    }


def _reference_step(x, h, p):
    """Pure-JAX reference reproducing one torch GRU step + linear heads."""
    H = p["w_hh"].shape[0]
    gi = x @ p["w_ih"] + p["b_ih"]
    gh = h @ p["w_hh"] + p["b_hh"]
    r = jax.nn.sigmoid(gi[:, :H] + gh[:, :H])
    z = jax.nn.sigmoid(gi[:, H:2 * H] + gh[:, H:2 * H])
    n = jnp.tanh(gi[:, 2 * H:] + r * gh[:, 2 * H:])
    h_new = (1.0 - z) * n + z * h
    logits = h_new @ p["w_actor"] + p["b_actor"]
    value = h_new @ p["w_critic"] + p["b_critic"]
    return logits, value, h_new


if __name__ == "__main__":
    key = jax.random.PRNGKey(0)
    k_param, k_x, k_seq = jax.random.split(key, 3)

    B = 8       # full f32 sublane utilization
    T = 8       # short rollout to exercise the in-kernel time loop
    params = init_params(k_param)
    packed = pack_params(params)

    # --- Single step: exact semantics of the torch module's forward() ---
    x = jax.random.normal(k_x, (B, INPUT_SIZE), jnp.float32)
    hidden = jnp.zeros((1, B, HIDDEN_SIZE), jnp.float32)   # init_hidden(batch_size=B)

    logits, value, new_hidden = actor_critic_forward(x, hidden, packed)
    jax.block_until_ready((logits, value, new_hidden))

    ref_logits, ref_value, ref_h = _reference_step(x, hidden[0], params)
    assert logits.shape == (B, NUM_ACTIONS)
    assert value.shape == (B, 1)
    assert new_hidden.shape == (1, B, HIDDEN_SIZE)
    assert jnp.allclose(logits, ref_logits, atol=1e-4)
    assert jnp.allclose(value, ref_value, atol=1e-4)
    assert jnp.allclose(new_hidden[0], ref_h, atol=1e-4)

    # --- Rollout: time loop inside the kernel, weights VMEM-resident ---
    xs = jax.random.normal(k_seq, (T, B, INPUT_SIZE), jnp.float32)
    seq_logits, seq_values, seq_hidden = actor_critic_sequence(xs, hidden, packed)
    jax.block_until_ready((seq_logits, seq_values, seq_hidden))

    h_ref = hidden[0]
    for t in range(T):
        rl, rv, h_ref = _reference_step(xs[t], h_ref, params)
        assert jnp.allclose(seq_logits[t], rl, atol=1e-4)
        assert jnp.allclose(seq_values[t], rv, atol=1e-4)
    assert jnp.allclose(seq_hidden[0], h_ref, atol=1e-4)

    print("KERNEL_OK")
</pallas_src>

<mosaic_0001>
module attributes {stable_mosaic.version = 11 : i64} {
  func.func @_actor_critic_kernel(%arg0: i32, %arg1: memref<8x128xf32, #tpu.memory_space<vmem>>, %arg2: memref<1x8x15xf32, #tpu.memory_space<vmem>>, %arg3: memref<144x512xf32, #tpu.memory_space<vmem>>, %arg4: memref<136x128xf32, #tpu.memory_space<vmem>>, %arg5: memref<1x8x256xf32, #tpu.memory_space<vmem>>, %arg6: memref<8x144xf32, #tpu.memory_space<vmem>>) attributes {dimension_semantics = [#tpu.dimension_semantics<arbitrary>], iteration_bounds = array<i64: 1>, scalar_prefetch = 0 : i64, scratch_operands = 1 : i64, tpu.core_type = #tpu.core_type<tc>, window_params = [{pipeline_mode = #tpu.pipeline_mode<synchronous>, transform_indices = @transform_0, window_bounds = array<i64: 8, 128>}, {transform_indices = @transform_1, window_bounds = array<i64: 1, 8, 15>}, {pipeline_mode = #tpu.pipeline_mode<synchronous>, transform_indices = @transform_2, window_bounds = array<i64: 144, 512>}, {pipeline_mode = #tpu.pipeline_mode<synchronous>, transform_indices = @transform_3, window_bounds = array<i64: 136, 128>}, {transform_indices = @transform_4, window_bounds = array<i64: 1, 8, 256>}]} {
    %c0_i32 = arith.constant 0 : i32
    %0 = arith.cmpi eq, %arg0, %c0_i32 : i32
    %1 = arith.extui %0 : i1 to i32
    %c0_i32_0 = arith.constant 0 : i32
    %2 = arith.cmpi ne, %1, %c0_i32_0 : i32
    scf.if %2 {
      %c0_24 = arith.constant 0 : index
      %c0_25 = arith.constant 0 : index
      %44 = vector.load %arg1[%c0_24, %c0_25] : memref<8x128xf32, #tpu.memory_space<vmem>>, vector<8x128xf32>
      %c0_26 = arith.constant 0 : index
      %c0_27 = arith.constant 0 : index
      %45 = vector.load %arg6[%c0_26, %c0_27] : memref<8x144xf32, #tpu.memory_space<vmem>>, vector<8x128xf32>
      tpu.vector_store %arg6[%c0_26, %c0_27], %44 {strides = array<i32>} : memref<8x144xf32, #tpu.memory_space<vmem>>, vector<8x128xf32>,
      %cst_28 = arith.constant 1.000000e+00 : f32
      %46 = vector.broadcast %cst_28 : f32 to vector<8x1xf32>
      %c0_29 = arith.constant 0 : index
      %c143 = arith.constant 143 : index
      %47 = vector.load %arg6[%c0_29, %c143] : memref<8x144xf32, #tpu.memory_space<vmem>>, vector<8x1xf32>
      tpu.vector_store %arg6[%c0_29, %c143], %46 {strides = array<i32>} : memref<8x144xf32, #tpu.memory_space<vmem>>, vector<8x1xf32>,
    } else {
    }
    %c0 = arith.constant 0 : index
    %c0_1 = arith.constant 0 : index
    %c0_2 = arith.constant 0 : index
    %3 = vector.load %arg2[%c0, %c0_1, %c0_2] : memref<1x8x15xf32, #tpu.memory_space<vmem>>, vector<1x8x15xf32>
    %4 = vector.shape_cast %3 : vector<1x8x15xf32> to vector<8x15xf32>
    %c0_3 = arith.constant 0 : index
    %c128 = arith.constant 128 : index
    %5 = vector.load %arg6[%c0_3, %c128] : memref<8x144xf32, #tpu.memory_space<vmem>>, vector<8x15xf32>
    tpu.vector_store %arg6[%c0_3, %c128], %4 {strides = array<i32>} : memref<8x144xf32, #tpu.memory_space<vmem>>, vector<8x15xf32>,
    %c0_4 = arith.constant 0 : index
    %c0_5 = arith.constant 0 : index
    %6 = vector.load %arg6[%c0_4, %c0_5] : memref<8x144xf32, #tpu.memory_space<vmem>>, vector<8x144xf32>
    %7 = vector.extract_strided_slice %6 {offsets = [0, 0], sizes = [8, 128], strides = [1, 1]} : vector<8x144xf32> to vector<8x128xf32>
    %c0_6 = arith.constant 0 : index
    %c0_7 = arith.constant 0 : index
    %8 = vector.load %arg3[%c0_6, %c0_7] : memref<144x512xf32, #tpu.memory_space<vmem>>, vector<144x512xf32>
    %cst = arith.constant dense<0.000000e+00> : vector<8x512xf32>
    %9 = tpu.matmul %6, %8, %cst {dimension_numbers = #tpu.dot_dimension_numbers<[1], [0], [0], [1], [0, 0, 1, 1], [], []>} : vector<8x144xf32>, vector<144x512xf32>, vector<8x512xf32> -> vector<8x512xf32>
    %10 = vector.extract_strided_slice %9 {offsets = [0, 0], sizes = [8, 128], strides = [1, 1]} : vector<8x512xf32> to vector<8x128xf32>
    %11 = arith.negf %10 : vector<8x128xf32>
    %12 = math.exp %11 : vector<8x128xf32>
    %cst_8 = arith.constant 1.000000e+00 : f32
    %13 = vector.broadcast %cst_8 : f32 to vector<8x128xf32>
    %14 = arith.addf %13, %12 : vector<8x128xf32>
    %15 = arith.divf %13, %14 : vector<8x128xf32>
    %16 = vector.extract_strided_slice %9 {offsets = [0, 128], sizes = [8, 128], strides = [1, 1]} : vector<8x512xf32> to vector<8x128xf32>
    %17 = arith.negf %16 : vector<8x128xf32>
    %18 = math.exp %17 : vector<8x128xf32>
    %cst_9 = arith.constant 1.000000e+00 : f32
    %19 = vector.broadcast %cst_9 : f32 to vector<8x128xf32>
    %20 = arith.addf %19, %18 : vector<8x128xf32>
    %21 = arith.divf %19, %20 : vector<8x128xf32>
    %22 = vector.extract_strided_slice %9 {offsets = [0, 256], sizes = [8, 128], strides = [1, 1]} : vector<8x512xf32> to vector<8x128xf32>
    %23 = vector.extract_strided_slice %9 {offsets = [0, 384], sizes = [8, 128], strides = [1, 1]} : vector<8x512xf32> to vector<8x128xf32>
    %24 = arith.mulf %15, %23 : vector<8x128xf32>
    %25 = arith.addf %22, %24 : vector<8x128xf32>
    %26 = math.tanh %25 : vector<8x128xf32>
    %cst_10 = arith.constant 1.000000e+00 : f32
    %27 = vector.broadcast %cst_10 : f32 to vector<8x128xf32>
    %28 = arith.subf %27, %21 : vector<8x128xf32>
    %29 = arith.mulf %28, %26 : vector<8x128xf32>
    %30 = arith.mulf %21, %7 : vector<8x128xf32>
    %31 = arith.addf %29, %30 : vector<8x128xf32>
    %c0_11 = arith.constant 0 : index
    %c0_12 = arith.constant 0 : index
    %32 = vector.load %arg6[%c0_11, %c0_12] : memref<8x144xf32, #tpu.memory_space<vmem>>, vector<8x128xf32>
    tpu.vector_store %arg6[%c0_11, %c0_12], %31 {strides = array<i32>} : memref<8x144xf32, #tpu.memory_space<vmem>>, vector<8x128xf32>,
    %c0_13 = arith.constant 0 : index
    %c0_14 = arith.constant 0 : index
    %33 = vector.load %arg4[%c0_13, %c0_14] : memref<136x128xf32, #tpu.memory_space<vmem>>, vector<128x128xf32>
    %cst_15 = arith.constant dense<0.000000e+00> : vector<8x128xf32>
    %34 = tpu.matmul %31, %33, %cst_15 {dimension_numbers = #tpu.dot_dimension_numbers<[1], [0], [0], [1], [0, 0, 1, 1], [], []>} : vector<8x128xf32>, vector<128x128xf32>, vector<8x128xf32> -> vector<8x128xf32>
    %c128_16 = arith.constant 128 : index
    %c0_17 = arith.constant 0 : index
    %35 = vector.load %arg4[%c128_16, %c0_17] : memref<136x128xf32, #tpu.memory_space<vmem>>, vector<1x128xf32>
    %36 = vector.broadcast %35 : vector<1x128xf32> to vector<8x128xf32>
    %37 = arith.addf %34, %36 : vector<8x128xf32>
    %c0_18 = arith.constant 0 : index
    %c0_19 = arith.constant 0 : index
    %c0_20 = arith.constant 0 : index
    %38 = vector.load %arg5[%c0_18, %c0_19, %c0_20] : memref<1x8x256xf32, #tpu.memory_space<vmem>>, vector<1x8x128xf32>
    %39 = vector.shape_cast %38 : vector<1x8x128xf32> to vector<8x128xf32>
    %40 = vector.shape_cast %31 : vector<8x128xf32> to vector<1x8x128xf32>
    tpu.vector_store %arg5[%c0_18, %c0_19, %c0_20], %40 {strides = array<i32>} : memref<1x8x256xf32, #tpu.memory_space<vmem>>, vector<1x8x128xf32>,
    %c0_21 = arith.constant 0 : index
    %c0_22 = arith.constant 0 : index
    %c128_23 = arith.constant 128 : index
    %41 = vector.load %arg5[%c0_21, %c0_22, %c128_23] : memref<1x8x256xf32, #tpu.memory_space<vmem>>, vector<1x8x128xf32>
    %42 = vector.shape_cast %41 : vector<1x8x128xf32> to vector<8x128xf32>
    %43 = vector.shape_cast %37 : vector<8x128xf32> to vector<1x8x128xf32>
    tpu.vector_store %arg5[%c0_21, %c0_22, %c128_23], %43 {strides = array<i32>} : memref<1x8x256xf32, #tpu.memory_space<vmem>>, vector<1x8x128xf32>,
    return
  }
  func.func @transform_0(%arg0: i32) -> (i32, i32) {
    %c0_i32 = arith.constant 0 : i32
    %c0_i32_0 = arith.constant 0 : i32
    %c0_i32_1 = arith.constant 0 : i32
    return %c0_i32, %c0_i32_0 : i32, i32
  }
  func.func @transform_1(%arg0: i32) -> (i32, i32, i32) {
    %c0_i32 = arith.constant 0 : i32
    %c0_i32_0 = arith.constant 0 : i32
    %c0_i32_1 = arith.constant 0 : i32
    return %arg0, %c0_i32, %c0_i32_0 : i32, i32, i32
  }
  func.func @transform_2(%arg0: i32) -> (i32, i32) {
    %c0_i32 = arith.constant 0 : i32
    %c0_i32_0 = arith.constant 0 : i32
    %c0_i32_1 = arith.constant 0 : i32
    return %c0_i32, %c0_i32_0 : i32, i32
  }
  func.func @transform_3(%arg0: i32) -> (i32, i32) {
    %c0_i32 = arith.constant 0 : i32
    %c0_i32_0 = arith.constant 0 : i32
    %c0_i32_1 = arith.constant 0 : i32
    return %c0_i32, %c0_i32_0 : i32, i32
  }
  func.func @transform_4(%arg0: i32) -> (i32, i32, i32) {
    %c0_i32 = arith.constant 0 : i32
    %c0_i32_0 = arith.constant 0 : i32
    %c0_i32_1 = arith.constant 0 : i32
    return %arg0, %c0_i32, %c0_i32_0 : i32, i32, i32
  }
}

</mosaic_0001>

<bundles_post_ra>
// kernel: tpu_custom_call.1
= control target key start
LH: loop header
LB: loop body
LE: loop exit
PB: predicated region body
PF: predicated region fallthrough
CT: control target
= control target key end

     0   :  { %9 = vsyncpa [#allocation4], 0  ;;  %s829_s0 = inlined_call_operand.hbm [shape: f32[8,128], index: 0, kind: input, shape index: {}]   ;;  %s830_s1 = inlined_call_operand.hbm [shape: f32[1,8,15], index: 1, kind: input, shape index: {}]   ;;  %s831_s2 = inlined_call_operand.hbm [shape: f32[144,512], index: 2, kind: input, shape index: {}]   ;;  %s832_s3 = inlined_call_operand.hbm [shape: f32[136,128], index: 3, kind: input, shape index: {}]   ;;  %s833_s4 = inlined_call_operand.hbm [shape: f32[1,8,256], index: 4, kind: output, shape index: {}]  }
   0x1   :  { %10 = vsyncpa [#allocation7], 0 }
   0x2   :  { %11 = vsyncpa [#allocation10], 0 }
   0x3   :  { %12 = vsyncpa [#allocation5], 0  ;;  %s724_s15 = smov [#allocation6]   ;;  %s725_s17 = smov [#allocation3]  }
   0x4   :  { %s29_s16 = sshll.u32 %s724_s15, 4  ;;  %s19_s18 = sshll.u32 %s725_s17, 4  ;;  %s30_s16 = int_to_ptr.vmem [resolvable:$true] %s29_s16  ;;  %s20_s18 = int_to_ptr.vmem [resolvable:$true] %s19_s18 }
   0x5   :  { %s606_s21 = scalar_lea.hbm %s830_s1, 128 }
   0x6   :  { %p607_p0 = scmp.ne.s32.totalorder %s830_s1, %s606_s21  ;;  %p610_p1 = scmp.lt.u32.totalorder %s606_s21, %s830_s1 }
   0x8   :  { %p612_p2 = pnand %p610_p1, %p607_p0 }
   0xa   :  { %615 = shalt.err (!%p612_p2)
}
   0xb   :  { %s616_s26 = scalar_lea.vmem %s30_s16, 128  ;;  %p621_p4 = scmp.lt.s32.totalorder %s30_s16, %s30_s16 }
   0xc   :  { %p617_p3 = scmp.ne.s32.totalorder %s30_s16, %s616_s26  ;;  %p622_p5 = scmp.lt.s32.totalorder %s616_s26, %s616_s26 }
   0xe   :  { %p623_p6 = por %p622_p5, %p621_p4 }
  0x10   :  { %p624_p7 = pnand %p623_p6, %p617_p3 }
  0x12   :  { %627 = shalt.err (!%p624_p7)
}
  0x13   :  { %32 = dma.hbm_to_vmem [thread:$0]  %s830_s1, 128, %s30_s16, [#allocation7]  }
  0x14   :  { %s628_s5 = scalar_lea.hbm %s829_s0, 128 }
  0x15   :  { %p629_p8 = scmp.ne.s32.totalorder %s829_s0, %s628_s5  ;;  %p632_p9 = scmp.lt.u32.totalorder %s628_s5, %s829_s0 }
  0x17   :  { %p634_p10 = pnand %p632_p9, %p629_p8 }
  0x19   :  { %637 = shalt.err (!%p634_p10)
}
  0x1a   :  { %s638_s10 = scalar_lea.vmem %s20_s18, 128  ;;  %p643_p12 = scmp.lt.s32.totalorder %s20_s18, %s20_s18 }
  0x1b   :  { %p639_p11 = scmp.ne.s32.totalorder %s20_s18, %s638_s10  ;;  %p644_p13 = scmp.lt.s32.totalorder %s638_s10, %s638_s10 }
  0x1d   :  { %p645_p0 = por %p644_p13, %p643_p12 }
  0x1f   :  { %p646_p1 = pnand %p645_p0, %p639_p11 }
  0x21   :  { %649 = shalt.err (!%p646_p1)
}
  0x22   :  { %22 = dma.hbm_to_vmem [thread:$0]  %s829_s0, 128, %s20_s18, [#allocation4]  }
  0x23   :  { %s726_s12 = smov [#allocation8]   ;;  %s650_s16 = scalar_lea.hbm %s831_s2, 9216 }
  0x24   :  { %s38_s13 = sshll.u32 %s726_s12, 4  ;;  %p651_p2 = scmp.ne.s32.totalorder %s831_s2, %s650_s16  ;;  %s39_s13 = int_to_ptr.vmem [resolvable:$true] %s38_s13 }
  0x25   :  { %p654_p3 = scmp.lt.u32.totalorder %s650_s16, %s831_s2 }
  0x27   :  { %p656_p4 = pnand %p654_p3, %p651_p2 }
  0x29   :  { %659 = shalt.err (!%p656_p4)
}
  0x2a   :  { %s660_s22 = scalar_lea.vmem %s39_s13, 9216  ;;  %p665_p6 = scmp.lt.s32.totalorder %s39_s13, %s39_s13 }
  0x2b   :  { %p661_p5 = scmp.ne.s32.totalorder %s39_s13, %s660_s22  ;;  %p666_p7 = scmp.lt.s32.totalorder %s660_s22, %s660_s22 }
  0x2d   :  { %p667_p8 = por %p666_p7, %p665_p6 }
  0x2f   :  { %p668_p9 = pnand %p667_p8, %p661_p5 }
  0x31   :  { %671 = shalt.err (!%p668_p9)
}
  0x32   :  { %s727_s0 = smov 512   ;;  %s728_s18 = smov 32  }
  0x33   :  { %44 = dma.hbm_to_vmem [thread:$0]  %s831_s2, 9216, %s39_s13, [#allocation7], %s727_s0, %s727_s0, %s728_s18  }
  0x34   :  { %s729_s25 = smov [#allocation9]   ;;  %s672_s29 = scalar_lea.hbm %s832_s3, 2176 }
  0x35   :  { %s50_s26 = sshll.u32 %s729_s25, 4  ;;  %p673_p10 = scmp.ne.s32.totalorder %s832_s3, %s672_s29  ;;  %s51_s26 = int_to_ptr.vmem [resolvable:$true] %s50_s26 }
  0x36   :  { %p676_p11 = scmp.lt.u32.totalorder %s672_s29, %s832_s3 }
  0x38   :  { %p678_p12 = pnand %p676_p11, %p673_p10 }
  0x3a   :  { %681 = shalt.err (!%p678_p12)
}
  0x3b   :  { %s682_s8 = scalar_lea.vmem %s51_s26, 2176  ;;  %p687_p0 = scmp.lt.s32.totalorder %s51_s26, %s51_s26 }
  0x3c   :  { %p683_p13 = scmp.ne.s32.totalorder %s51_s26, %s682_s8  ;;  %p688_p1 = scmp.lt.s32.totalorder %s682_s8, %s682_s8 }
  0x3e   :  { %p689_p2 = por %p688_p1, %p687_p0 }
  0x40   :  { %p690_p3 = pnand %p689_p2, %p683_p13 }
  0x42   :  { %693 = shalt.err (!%p690_p3)
}
  0x43   :  { %s730_s2 = smov 128   ;;  %s731_s9 = smov 8  }
  0x44   :  { %56 = dma.hbm_to_vmem [thread:$0]  %s832_s3, 2176, %s51_s26, [#allocation10], %s730_s2, %s730_s2, %s731_s9  }
  0x45   :  { %716 = dma.done.wait [#allocation4], 128  }
  0x46   :  { %717 = vsyncadd [#allocation4], 4294967168 }
  0x47   :  { %718 = dma.done.wait [#allocation7], 9344  }
  0x48   :  { %719 = vsyncadd [#allocation7], 4294957952 }
  0x49   :  { %720 = dma.done.wait [#allocation10], 2176  }
  0x4a   :  { %721 = vsyncadd [#allocation10], 4294965120  ;;  %vm75_vm0 = vcmask 130168   ;;  %v732_v0 = vmov 1.0   ;;  %v83_v1 = vld [vmem:[#allocation8 + $0x8] sm:$0xff]  ;;  %v82_v3 = vld [vmem:[#allocation8] sm:$0xff] }
  0x4b   :  { %76 = vst.msk [vmem:[#allocation2 + $0x8] sm:$0xff] %vm75_vm0, %v732_v0  ;;  %v87_v2 = vld [vmem:[#allocation8 + $0x28] sm:$0xff]  ;;  %v86_v5 = vld [vmem:[#allocation8 + $0x20] sm:$0xff]  ;;  %v85_v22 = vld [vmem:[#allocation8 + $0x18] sm:$0xff]  ;;  %vm78_vm1 = vcmask 121856   ;;  %vm154_vm2 = vcmask 130048  }
  0x4c   :  { %v487_v4 = vpack.c.bf16 %v87_v2, %v83_v1  ;;  %v91_v6 = vld [vmem:[#allocation8 + $0x48] sm:$0xff]  ;;  %v489_v8 = vpack.c.bf16 %v86_v5, %v82_v3  ;;  %v90_v10 = vld [vmem:[#allocation8 + $0x40] sm:$0xff]  ;;  %v89_v26 = vld [vmem:[#allocation8 + $0x38] sm:$0xff]  ;;  %vm734_vm3 = vmmov 0   ;;  %s736_s3 = smov [#allocation11]  }
  0x4d   :  { %v95_v7 = vld [vmem:[#allocation8 + $0x68] sm:$0xff]  ;;  %v94_v11 = vld [vmem:[#allocation8 + $0x60] sm:$0xff]  ;;  %v523_v28 = vpack.c.bf16 %v89_v26, %v85_v22  ;;  %v84_v29 = vld [vmem:[#allocation8 + $0x10] sm:$0xff]  ;;  %s419_s11 = sshll.u32 %s736_s3, 4  ;;  %s420_s11 = int_to_ptr.vmem [resolvable:$true] %s419_s11 }
  0x4e   :  { %v491_v9 = vpack.c.bf16 %v95_v7, %v91_v6  ;;  %v99_v12 = vld [vmem:[#allocation8 + $0x88] sm:$0xff]  ;;  %488 = vmatprep.subr.bf16.mxu0 %v487_v4  ;;  %v493_v14 = vpack.c.bf16 %v94_v11, %v90_v10  ;;  %v98_v16 = vld [vmem:[#allocation8 + $0x80] sm:$0xff]  ;;  %v88_v30 = vld [vmem:[#allocation8 + $0x30] sm:$0xff]  ;;  %s694_s12 = scalar_lea.vmem %s420_s11, 256  ;;  %p699_p5 = scmp.lt.s32.totalorder %s420_s11, %s420_s11 }
  0x4f   :  { %v103_v13 = vld [vmem:[#allocation8 + $0xa8] sm:$0xff]  ;;  %490 = vmatpush1.bf16.msra.mxu0 %v489_v8  ;;  %v102_v17 = vld [vmem:[#allocation8 + $0xa0] sm:$0xff]  ;;  %v525_v31 = vpack.c.bf16 %v88_v30, %v84_v29  ;;  %v93_v32 = vld [vmem:[#allocation8 + $0x58] sm:$0xff]  ;;  %524 = vmatprep.subr.bf16.mxu1 %v523_v28  ;;  %p695_p4 = scmp.ne.s32.totalorder %s420_s11, %s694_s12  ;;  %p700_p6 = scmp.lt.s32.totalorder %s694_s12, %s694_s12 }
  0x50   :  { %492 = vmatprep.subr.bf16.mxu0 %v491_v9  ;;  %v495_v15 = vpack.c.bf16 %v103_v13, %v99_v12  ;;  %v107_v18 = vld [vmem:[#allocation8 + $0xc8] sm:$0xff]  ;;  %v497_v20 = vpack.c.bf16 %v102_v17, %v98_v16  ;;  %v106_v21 = vld [vmem:[#allocation8 + $0xc0] sm:$0xff]  ;;  %v97_v33 = vld [vmem:[#allocation8 + $0x78] sm:$0xff] }
  0x51   :  { %v111_v19 = vld [vmem:[#allocation8 + $0xe8] sm:$0xff]  ;;  %v110_v24 = vld [vmem:[#allocation8 + $0xe0] sm:$0xff]  ;;  %v527_v36 = vpack.c.bf16 %v97_v33, %v93_v32  ;;  %v92_v37 = vld [vmem:[#allocation8 + $0x50] sm:$0xff]  ;;  %526 = vmatpush1.bf16.msra.mxu1 %v525_v31  ;;  %p701_p7 = por %p700_p6, %p699_p5 }
  0x52   :  { %v499_v23 = vpack.c.bf16 %v111_v19, %v107_v18  ;;  %v115_v25 = vld [vmem:[#allocation8 + $0x108] sm:$0xff]  ;;  %v501_v34 = vpack.c.bf16 %v110_v24, %v106_v21  ;;  %v114_v35 = vld [vmem:[#allocation8 + $0x100] sm:$0xff]  ;;  %v96_v41 = vld [vmem:[#allocation8 + $0x70] sm:$0xff] }
  0x53   :  { %494 = vmatpush1.bf16.msra.mxu0 %v493_v14  ;;  %v119_v27 = vld [vmem:[#allocation8 + $0x128] sm:$0xff]  ;;  %v118_v39 = vld [vmem:[#allocation8 + $0x120] sm:$0xff]  ;;  %528 = vmatprep.subr.bf16.mxu1 %v527_v36  ;;  %v529_v43 = vpack.c.bf16 %v96_v41, %v92_v37  ;;  %v101_v44 = vld [vmem:[#allocation8 + $0x98] sm:$0xff]  ;;  %p702_p8 = pnand %p701_p7, %p695_p4 }
  0x54   :  { %496 = vmatprep.subr.bf16.mxu0 %v495_v15  ;;  %v503_v38 = vpack.c.bf16 %v119_v27, %v115_v25  ;;  %v123_v40 = vld [vmem:[#allocation8 + $0x148] sm:$0xff]  ;;  %v105_v45 = vld [vmem:[#allocation8 + $0xb8] sm:$0xff]  ;;  %v100_v47 = vld [vmem:[#allocation8 + $0x90] sm:$0xff]  ;;  %v505_v49 = vpack.c.bf16 %v118_v39, %v114_v35 }
  0x55   :  { %v127_v42 = vld [vmem:[#allocation8 + $0x168] sm:$0xff]  ;;  %v531_v46 = vpack.c.bf16 %v105_v45, %v101_v44  ;;  %v104_v48 = vld [vmem:[#allocation8 + $0xb0] sm:$0xff]  ;;  %v77_v50 = vld [vmem:[#allocation6] sm:$0xff]  ;;  %530 = vmatpush1.bf16.msra.mxu1 %v529_v43 }
  0x56   :  { %v109_v51 = vld [vmem:[#allocation8 + $0xd8] sm:$0xff]  ;;  %v507_v52 = vpack.c.bf16 %v127_v42, %v123_v40  ;;  %v122_v53 = vld [vmem:[#allocation8 + $0x140] sm:$0xff]  ;;  %v533_v55 = vpack.c.bf16 %v104_v48, %v100_v47  ;;  %79 = vst.msk [vmem:[#allocation2 + $0x8] sm:$0xff] %vm78_vm1, %v77_v50  ;;  %v131_v57 = vld [vmem:[#allocation8 + $0x188] sm:$0xff] }
  0x57   :  { %498 = vmatpush1.bf16.msra.mxu0 %v497_v20  ;;  %v126_v54 = vld [vmem:[#allocation8 + $0x160] sm:$0xff]  ;;  %v113_v56 = vld [vmem:[#allocation8 + $0xf8] sm:$0xff]  ;;  %v135_v58 = vld [vmem:[#allocation8 + $0x1a8] sm:$0xff]  ;;  %532 = vmatprep.subr.bf16.mxu1 %v531_v46 }
  0x58   :  { %500 = vmatprep.subr.bf16.mxu0 %v499_v23  ;;  %v535_v59 = vpack.c.bf16 %v113_v56, %v109_v51  ;;  %v108_v60 = vld [vmem:[#allocation8 + $0xd0] sm:$0xff]  ;;  %v509_v62 = vpack.c.bf16 %v126_v54, %v122_v53  ;;  %v117_v63 = vld [vmem:[#allocation8 + $0x118] sm:$0xff]  ;;  %v511_v1 = vpack.c.bf16 %v135_v58, %v131_v57  ;;  %v130_v2 = vld [vmem:[#allocation8 + $0x180] sm:$0xff]  ;;  %v733_v51 = vmov 0.0|0.0  }
  0x59   :  { %v112_v61 = vld [vmem:[#allocation8 + $0xf0] sm:$0xff]  ;;  %v121_v0 = vld [vmem:[#allocation8 + $0x138] sm:$0xff]  ;;  %v134_v3 = vld [vmem:[#allocation8 + $0x1a0] sm:$0xff]  ;;  %534 = vmatpush1.bf16.msra.mxu1 %v533_v55 }
  0x5a   :  { %v139_v4 = vld [vmem:[#allocation8 + $0x1c8] sm:$0xff]  ;;  %536 = vmatprep.subr.bf16.mxu1 %v535_v59  ;;  %v537_v6 = vpack.c.bf16 %v112_v61, %v108_v60  ;;  %v539_v7 = vpack.c.bf16 %v121_v0, %v117_v63  ;;  %v116_v8 = vld [vmem:[#allocation8 + $0x110] sm:$0xff]  ;;  %v513_v10 = vpack.c.bf16 %v134_v3, %v130_v2  ;;  %v125_v12 = vld [vmem:[#allocation8 + $0x158] sm:$0xff] }
  0x5b   :  { %502 = vmatpush1.bf16.msra.mxu0 %v501_v34  ;;  %v143_v5 = vld [vmem:[#allocation8 + $0x1e8] sm:$0xff]  ;;  %v120_v9 = vld [vmem:[#allocation8 + $0x130] sm:$0xff]  ;;  %v129_v13 = vld [vmem:[#allocation8 + $0x178] sm:$0xff] }
  0x5c   :  { %504 = vmatprep.subr.bf16.mxu0 %v503_v38  ;;  %v515_v14 = vpack.c.bf16 %v143_v5, %v139_v4  ;;  %v138_v15 = vld [vmem:[#allocation8 + $0x1c0] sm:$0xff]  ;;  %v147_v17 = vld [vmem:[#allocation8 + $0x208] sm:$0xff]  ;;  %v541_v19 = vpack.c.bf16 %v120_v9, %v116_v8  ;;  %v543_v20 = vpack.c.bf16 %v129_v13, %v125_v12  ;;  %v124_v21 = vld [vmem:[#allocation8 + $0x150] sm:$0xff]  ;;  %v735_v5 = vmov 0.0  }
  0x5d   :  { %v81_v11 = vld [vmem:[#allocation2 + $0x8] sm:$0xff]  ;;  %v142_v16 = vld [vmem:[#allocation8 + $0x1e0] sm:$0xff]  ;;  %538 = vmatpush1.bf16.msra.mxu1 %v537_v6  ;;  %v128_v22 = vld [vmem:[#allocation8 + $0x170] sm:$0xff] }
  0x5e   :  { %430 = vmatprep.mubr.msk.f32.mxu0 %vm154_vm2, %v81_v11  ;;  %v151_v18 = vld [vmem:[#allocation8 + $0x228] sm:$0xff]  ;;  %431 = vmatprep.mubr.msk.f32.mxu1 %vm154_vm2, %v81_v11  ;;  %v517_v23 = vpack.c.bf16 %v142_v16, %v138_v15  ;;  %v133_v24 = vld [vmem:[#allocation8 + $0x198] sm:$0xff]  ;;  %v146_v27 = vld [vmem:[#allocation8 + $0x200] sm:$0xff]  ;;  %v545_v29 = vpack.c.bf16 %v128_v22, %v124_v21 }
  0x5f   :  { %506 = vmatpush1.bf16.msra.mxu0 %v505_v49  ;;  %540 = vmatprep.subr.bf16.mxu1 %v539_v7  ;;  %v137_v25 = vld [vmem:[#allocation8 + $0x1b8] sm:$0xff]  ;;  %v519_v26 = vpack.c.bf16 %v151_v18, %v147_v17  ;;  %v150_v28 = vld [vmem:[#allocation8 + $0x220] sm:$0xff]  ;;  %v132_v31 = vld [vmem:[#allocation8 + $0x190] sm:$0xff] }
  0x60   :  { %508 = vmatprep.subr.bf16.mxu0 %v507_v52  ;;  %v547_v30 = vpack.c.bf16 %v137_v25, %v133_v24  ;;  %v136_v32 = vld [vmem:[#allocation8 + $0x1b0] sm:$0xff]  ;;  %v521_v33 = vpack.c.bf16 %v150_v28, %v146_v27  ;;  %v141_v34 = vld [vmem:[#allocation8 + $0x1d8] sm:$0xff]  ;;  %v320_v48 = vld [vmem:[#allocation9] sm:$0xff] }
  0x61   :  { %542 = vmatpush1.bf16.msra.mxu1 %v541_v19  ;;  %v145_v35 = vld [vmem:[#allocation8 + $0x1f8] sm:$0xff]  ;;  %v549_v36 = vpack.c.bf16 %v136_v32, %v132_v31  ;;  %v140_v38 = vld [vmem:[#allocation8 + $0x1d0] sm:$0xff]  ;;  %v321_v49 = vld [vmem:[#allocation9 + $0x8] sm:$0xff] }
  0x62   :  { %544 = vmatprep.subr.bf16.mxu1 %v543_v20  ;;  %v551_v37 = vpack.c.bf16 %v145_v35, %v141_v34  ;;  %v144_v39 = vld [vmem:[#allocation8 + $0x1f0] sm:$0xff]  ;;  %v149_v41 = vld [vmem:[#allocation8 + $0x218] sm:$0xff]  ;;  %v560_v50 = vpack.c.bf16 %v321_v49, %v320_v48  ;;  %v324_v55 = vld [vmem:[#allocation9 + $0x20] sm:$0xff] }
  0x63   :  { %510 = vmatpush1.bf16.msra.mxu0 %v509_v62  ;;  %v812_v40 = vld [vmem:[#allocation3] sm:$0xff]  ;;  %v153_v42 = vld [vmem:[#allocation8 + $0x238] sm:$0xff]  ;;  %v553_v43 = vpack.c.bf16 %v144_v39, %v140_v38  ;;  %v325_v56 = vld [vmem:[#allocation9 + $0x28] sm:$0xff] }
  0x64   :  { %512 = vmatprep.subr.bf16.mxu0 %v511_v1  ;;  %v555_v44 = vpack.c.bf16 %v153_v42, %v149_v41  ;;  %v148_v45 = vld [vmem:[#allocation8 + $0x210] sm:$0xff]  ;;  %v323_v53 = vld [vmem:[#allocation9 + $0x18] sm:$0xff]  ;;  %v566_v57 = vpack.c.bf16 %v325_v56, %v324_v55  ;;  %v328_v61 = vld [vmem:[#allocation9 + $0x40] sm:$0xff] }
  0x65   :  { %546 = vmatpush1.bf16.msra.mxu1 %v545_v29  ;;  %v152_v46 = vld [vmem:[#allocation8 + $0x230] sm:$0xff]  ;;  %v327_v59 = vld [vmem:[#allocation9 + $0x38] sm:$0xff]  ;;  %v329_v62 = vld [vmem:[#allocation9 + $0x48] sm:$0xff] }
  0x66   :  { %548 = vmatprep.subr.bf16.mxu1 %v547_v30  ;;  %v557_v47 = vpack.c.bf16 %v152_v46, %v148_v45  ;;  %v322_v52 = vld [vmem:[#allocation9 + $0x10] sm:$0xff]  ;;  %v572_v63 = vpack.c.bf16 %v329_v62, %v328_v61  ;;  %v331_v1 = vld [vmem:[#allocation9 + $0x58] sm:$0xff]  ;;  %v332_v3 = vld [vmem:[#allocation9 + $0x60] sm:$0xff] }
  0x67   :  { %514 = vmatpush1.bf16.msra.mxu0 %v513_v10  ;;  %v563_v54 = vpack.c.bf16 %v323_v53, %v322_v52  ;;  %v326_v58 = vld [vmem:[#allocation9 + $0x30] sm:$0xff]  ;;  %v333_v4 = vld [vmem:[#allocation9 + $0x68] sm:$0xff]  ;;  %v335_v8 = vld [vmem:[#allocation9 + $0x78] sm:$0xff] }
  0x68   :  { %516 = vmatprep.subr.bf16.mxu0 %v515_v14  ;;  %v569_v60 = vpack.c.bf16 %v327_v59, %v326_v58  ;;  %v330_v0 = vld [vmem:[#allocation9 + $0x50] sm:$0xff]  ;;  %v578_v6 = vpack.c.bf16 %v333_v4, %v332_v3  ;;  %v434_v29 = vld [vmem:[#allocation9 + $0x80] ss:$0 sm:$0xff] }
  0x69   :  { %550 = vmatpush1.bf16.msra.mxu1 %v549_v36  ;;  %v575_v2 = vpack.c.bf16 %v331_v1, %v330_v0  ;;  %v334_v7 = vld [vmem:[#allocation9 + $0x70] sm:$0xff] }
  0x6a   :  { %552 = vmatprep.subr.bf16.mxu1 %v551_v37  ;;  %v581_v9 = vpack.c.bf16 %v335_v8, %v334_v7 }
  0x6b   :  { %518 = vmatpush1.bf16.msra.mxu0 %v517_v23 }
  0x6c   :  { %520 = vmatprep.subr.bf16.mxu0 %v519_v26 }
  0x6d   :  { %554 = vmatpush1.bf16.msra.mxu1 %v553_v43 }
  0x6e   :  { %556 = vmatprep.subr.bf16.mxu1 %v555_v44 }
  0x6f   :  { %522 = vmatpush1.bf16.msra.mxu0 %v521_v33 }
  0x70   :  { %559 = vmatprep.subr.bf16.mxu0 %v733_v51 }
  0x71   :  { %558 = vmatpush1.bf16.msra.mxu1 %v557_v47 }
  0x72   :  { %223 = vmatmul.mubr.f32.vlgmr.msra.gmra.mrb[0].mxu0 %v812_v40 }
  0x73   :  { %561 = vmatpush3.bf16.msra.mxu0 %v560_v50  ;;  %484 = vmatprep.mubr.msk.f32.mxu0 %vm734_vm3, %v735_v5 }
  0x74   :  { %294 = vmatmul.mubr.f32.vlgmr.msra.gmra.mrb[0].mxu1 %v812_v40  ;;  %562 = vmatprep.subr.bf16.mxu0 %v733_v51 }
  0x77   :  { %564 = vmatpush3.bf16.msra.mxu0 %v563_v54 }
  0x78   :  { %565 = vmatprep.subr.bf16.mxu0 %v733_v51 }
  0x7b   :  { %567 = vmatpush3.bf16.msra.mxu0 %v566_v57 }
  0x7c   :  { %568 = vmatprep.subr.bf16.mxu0 %v733_v51 }
  0x7f   :  { %570 = vmatpush3.bf16.msra.mxu0 %v569_v60 }
  0x80   :  { %571 = vmatprep.subr.bf16.mxu0 %v733_v51 }
  0x83   :  { %573 = vmatpush3.bf16.msra.mxu0 %v572_v63 }
  0x84   :  { %574 = vmatprep.subr.bf16.mxu0 %v733_v51 }
  0x87   :  { %576 = vmatpush3.bf16.msra.mxu0 %v575_v2 }
  0x88   :  { %577 = vmatprep.subr.bf16.mxu0 %v733_v51 }
  0x8b   :  { %579 = vmatpush3.bf16.msra.mxu0 %v578_v6 }
  0x8c   :  { %580 = vmatprep.subr.bf16.mxu0 %v733_v51 }
  0x8f   :  { %582 = vmatpush3.bf16.msra.mxu0 %v581_v9 }
 0x145   :  { %v224_v10 = vpop.f32.mrb[0].mxu0 }
 0x146   :  { %v432_v11 = vmul.f32 -1.442695, %v224_v10  ;;  %v226_v12 = vpop.f32.mrb[1].mxu0 }
 0x147   :  { %v433_v13 = vmul.f32 -1.442695, %v226_v12  ;;  %v295_v14 = vpop.f32.mrb[0].mxu1 }
 0x148   :  { %596 = vpow2.f32 %v432_v11  ;;  %v297_v15 = vpop.f32.mrb[1].mxu1 }
 0x149   :  { %598 = vpow2.f32 %v433_v13 }
 0x152   :  { %v597_v16 = vpop.eup %596 }
 0x153   :  { %v303_v17 = vadd.f32 1.0, %v597_v16  ;;  %v599_v18 = vpop.eup %598 }
 0x154   :  { %v309_v19 = vadd.f32 1.0, %v599_v18 }
 0x155   :  { %600 = vrcp.f32 %v303_v17 }
 0x156   :  { %602 = vrcp.f32 %v309_v19 }
 0x15f   :  { %v601_v20 = vpop.eup %600 }
 0x160   :  { %v312_v21 = vmul.f32 %v601_v20, %v297_v15  ;;  %v603_v23 = vpop.eup %602 }
 0x161   :  { %v315_v24 = vsub.f32 1.0, %v603_v23  ;;  %v317_v27 = vmul.f32 %v603_v23, %v812_v40 }
 0x162   :  { %v313_v22 = vadd.f32 %v312_v21, %v295_v14 }
 0x164   :  { %604 = vtanh.f32 %v313_v22 }
 0x16e   :  { %v605_v25 = vpop.eup %604 }
 0x16f   :  { %v316_v26 = vmul.f32 %v605_v25, %v315_v24 }
 0x171   :  { %v318_v28 = vadd.f32 %v317_v27, %v316_v26 }
 0x173   :  { %485 = vmatmul.mubr.f32.vlgmr.msra.gmra.mrb[2].mxu0 %v318_v28  ;;  %411 = vst [vmem:[#allocation11] sm:$0xff] %v318_v28 }
 0x246   :  { %v407_v30 = vpop.f32.mrb[2].mxu0 }
 0x247   :  { %v408_v31 = vadd.f32 %v434_v29, %v407_v30  ;;  %v486_v32 = vpop.f32.mrb[3].mxu0 }
 0x249   :  { %412 = vst [vmem:[#allocation11 + $0x8] sm:$0xff] %v408_v31 }
 0x24a   :  { %705 = shalt.err (!%p702_p8)
}
 0x24b   :  { %s706_s15 = scalar_lea.hbm %s833_s4, 256 }
 0x24c   :  { %p707_p9 = scmp.ne.s32.totalorder %s833_s4, %s706_s15  ;;  %p710_p10 = scmp.lt.u32.totalorder %s706_s15, %s833_s4 }
 0x24e   :  { %p712_p11 = pnand %p710_p10, %p707_p9 }
 0x250   :  { %715 = shalt.err (!%p712_p11)
}
 0x251   :  { %422 = dma.vmem_to_hbm [thread:$0]  %s420_s11, 256, %s833_s4, [#allocation5]  }
 0x252   :  { %722 = dma.done.wait [#allocation5], 256  }
 0x253   :  { %723 = vsyncadd [#allocation5], 4294967040 }
 0x254   :  { %426 = vsyncpa [#allocation4], 1 }
 0x255   :  { %427 = vsyncpa [#allocation7], 1 }
 0x256   :  { %428 = vsyncpa [#allocation10], 1 }
 0x257   :  { %429 = vsyncpa [#allocation5], 1 }

</bundles_post_ra>
